<compile_context>
chip_gen: v7x
topology: tpu7x:2x2x1
jax: 0.10.0
libtpu: 0.0.40
codegen_flags: <defaults>
</compile_context>

<pallas_src>
import math
import functools

import jax
import jax.numpy as jnp
from jax.experimental import pallas as pl
from jax.experimental.pallas import tpu as pltpu


def _round_up(x: int, m: int) -> int:
    return ((x + m - 1) // m) * m


# --------------------------------------------------------------------------
# Kernels
# --------------------------------------------------------------------------

def _matmul_kernel_acc(x_ref, w_ref, o_ref, acc_ref):
    """K-reduction with an f32 VMEM accumulator (for narrow output dtypes)."""
    @pl.when(pl.program_id(2) == 0)
    def _init():
        acc_ref[...] = jnp.zeros_like(acc_ref)

    acc_ref[...] += jnp.dot(
        x_ref[...], w_ref[...], preferred_element_type=jnp.float32
    )

    @pl.when(pl.program_id(2) == pl.num_programs(2) - 1)
    def _finalize():
        o_ref[...] = acc_ref[...].astype(o_ref.dtype)


def _matmul_kernel_f32out(x_ref, w_ref, o_ref):
    """K-reduction accumulating directly into the f32 output tile (no scratch)."""
    @pl.when(pl.program_id(2) == 0)
    def _init():
        o_ref[...] = jnp.zeros_like(o_ref)

    o_ref[...] += jnp.dot(
        x_ref[...], w_ref[...], preferred_element_type=jnp.float32
    )


# --------------------------------------------------------------------------
# Generation-aware configuration
# --------------------------------------------------------------------------

_TILE_DEFAULTS = {   # (tm, tn, tk) for large shapes
    "v5e": (512, 512, 2048),
    "v6e": (1024, 2048, 1024),
    "v7x": (1024, 2048, 512),
    "unknown": (512, 1024, 1024),
}
_VMEM_CAP = {        # per-call vmem_limit_bytes ceiling
    "v5e": 100 << 20,
    "v6e": 100 << 20,
    "v7x": 48 << 20,
    "unknown": 64 << 20,
}


def _tpu_generation():
    """Best-effort (generation, tensorcores_per_chip) from the device kind."""
    try:
        kind = jax.devices()[0].device_kind.lower()
    except Exception:
        return "unknown", 1
    if "v7" in kind:
        return "v7x", 2
    if "v6" in kind:
        return "v6e", 1
    if "v5" in kind and ("lite" in kind or "v5e" in kind):
        return "v5e", 1
    return "unknown", 1


def _pick_tile_m(M: int, tm_default: int, sub: int) -> int:
    """Largest M tile that keeps M padding small (padding M re-materializes x)."""
    cands = sorted(
        {c for c in (tm_default, 512, 256, 128) if c <= tm_default}, reverse=True
    )
    for cand in cands:
        cand = max(cand, sub)
        if (_round_up(M, cand) - M) * 4 <= M:  # <= 25% padding
            return cand
    return max(min(128, tm_default), sub)


# --------------------------------------------------------------------------
# Public API
# --------------------------------------------------------------------------

def prepare_weight(W: jax.Array, *, mxu_dtype=None) -> jax.Array:
    """One-time re-layout of the PyTorch-style (out, in) weight to (in, out)=(K, N).

    Call once at init (the weight is a static parameter); doing the transpose /
    cast inside every forward costs a full HBM round trip over the weight.
    """
    Wt = jnp.asarray(W).T
    if mxu_dtype is not None:
        Wt = Wt.astype(mxu_dtype)
    return Wt


@functools.partial(jax.jit, static_argnames=("mxu_dtype", "tm", "tn", "tk"))
def linear_forward(
    x: jax.Array,
    w_kn: jax.Array,
    *,
    mxu_dtype=None,
    tm: int | None = None,
    tn: int | None = None,
    tk: int | None = None,
) -> jax.Array:
    """y = x @ W.T where `w_kn` is the pre-laid-out (in, out) = (K, N) weight.

    mxu_dtype=jnp.bfloat16 (with a matching prepare_weight) runs the MXU at full
    rate with an f32 accumulation path and halves per-tile DMA bytes.
    """
    *lead, K = x.shape
    K_w, N = w_kn.shape
    assert K == K_w, "in_features mismatch"

    out_dtype = x.dtype
    x2 = x.reshape(-1, K)
    M = x2.shape[0]

    # MXU operand dtype. The weight should already be in this dtype (via
    # prepare_weight); casting it here would cost an HBM round trip.
    op_dtype = jnp.dtype(mxu_dtype) if mxu_dtype is not None else jnp.dtype(w_kn.dtype)
    if x2.dtype != op_dtype:
        x2 = x2.astype(op_dtype)
    if w_kn.dtype != op_dtype:
        w_kn = w_kn.astype(op_dtype)

    gen, n_cores = _tpu_generation()
    tm_d, tn_d, tk_d = _TILE_DEFAULTS[gen]
    if tm is not None:
        tm_d = tm
    if tn is not None:
        tn_d = tn
    if tk is not None:
        tk_d = tk

    in_item = op_dtype.itemsize
    out_item = jnp.dtype(out_dtype).itemsize
    sub = {4: 8, 2: 16, 1: 32}.get(in_item, 8)  # dtype-aware sublane packing

    small_m = M <= 256
    if small_m:
        # Decode-style call: x tile is tiny, so stream W in few, large steps.
        tm_c = max(_round_up(M, sub), sub)
        tn_c = min(max(tn_d, 2048), _round_up(N, 128))
        tk_c = min(max(tk_d, 2048), _round_up(K, 128))
        # TODO(synk): pipeline_mode=pl.Buffered(3) on the W BlockSpec to keep
        # the weight stream ahead of compute on long W streams.
    else:
        tm_c = _pick_tile_m(M, tm_d, sub)
        tn_c = min(tn_d, _round_up(N, 128))
        tk_c = min(tk_d, _round_up(K, 128))

    # v7x: 2 TensorCores per chip -> keep >= 2 parallel (M, N) grid points.
    if n_cores >= 2 and _round_up(M, tm_c) // tm_c == 1:
        while tn_c > 256 and _round_up(N, tn_c) // tn_c < 2:
            tn_c //= 2

    Mp = _round_up(M, tm_c)
    Np = _round_up(N, tn_c)
    Kp = _round_up(K, tk_c)

    # Pad only when actually needed (typical transformer K/N are 128-multiples).
    # Padded K contributes exact zeros to the reduction.
    if (Mp, Kp) != (M, K):
        x2 = jnp.pad(x2, ((0, Mp - M), (0, Kp - K)))
    if (Kp, Np) != (K, N):
        w_kn = jnp.pad(w_kn, ((0, Kp - K), (0, Np - N)))

    grid = (Mp // tm_c, Np // tn_c, Kp // tk_c)  # K (reduction) axis last

    use_scratch = out_dtype != jnp.float32
    kernel = _matmul_kernel_acc if use_scratch else _matmul_kernel_f32out
    scratch_shapes = [pltpu.VMEM((tm_c, tn_c), jnp.float32)] if use_scratch else []

    # Exact per-call VMEM: double-buffered input/output tiles (+ f32 acc) + headroom.
    est_vmem = (
        2 * (tm_c * tk_c + tk_c * tn_c) * in_item
        + 2 * tm_c * tn_c * out_item
        + (tm_c * tn_c * 4 if use_scratch else 0)
        + (2 << 20)
    )
    vmem_limit = int(min(max(est_vmem + est_vmem // 4, 32 << 20), _VMEM_CAP[gen]))

    # Advisory cost, accounting for grid re-reads: x streamed Np/tn times,
    # W streamed Mp/tm times.
    cost = pl.CostEstimate(
        flops=2 * M * N * K,
        transcendentals=0,
        bytes_accessed=(
            grid[1] * Mp * Kp * in_item
            + grid[0] * Kp * Np * in_item
            + Mp * Np * out_item
        ),
    )

    out = pl.pallas_call(
        kernel,
        out_shape=jax.ShapeDtypeStruct((Mp, Np), out_dtype),
        grid_spec=pltpu.PrefetchScalarGridSpec(
            num_scalar_prefetch=0,
            grid=grid,
            in_specs=[
                pl.BlockSpec((tm_c, tk_c), lambda i, j, k: (i, k)),
                pl.BlockSpec((tk_c, tn_c), lambda i, j, k: (k, j)),
            ],
            out_specs=pl.BlockSpec((tm_c, tn_c), lambda i, j, k: (i, j)),
            scratch_shapes=scratch_shapes,
        ),
        compiler_params=pltpu.CompilerParams(
            dimension_semantics=("parallel", "parallel", "arbitrary"),
            vmem_limit_bytes=vmem_limit,
        ),
        cost_estimate=cost,
    )(x2, w_kn)

    return out[:M, :N].reshape(*lead, N)


def init_linear_weight(key, in_features: int, out_features: int, dtype=jnp.float32):
    """Deterministic equivalent of nn.init.trunc_normal_(mean=0, std, a=-3std, b=3std)."""
    std = math.sqrt(2.0 / (in_features + out_features))
    w = jax.random.truncated_normal(
        key, lower=-3.0, upper=3.0, shape=(out_features, in_features), dtype=jnp.float32
    ) * std
    return w.astype(dtype)


if __name__ == "__main__":
    in_features = 32
    out_features = 64
    batch, seq = 2, 8

    key = jax.random.PRNGKey(0)
    k_w, k_x = jax.random.split(key)

    # PyTorch-style (out, in) parameter, as in the reference module.
    W = init_linear_weight(k_w, in_features, out_features)
    x = jax.random.normal(k_x, (batch, seq, in_features), dtype=jnp.float32)

    # One-time weight re-layout (hoisted out of the per-call path).
    Wt = prepare_weight(W)                                  # f32 (K, N)
    Wt_bf16 = prepare_weight(W, mxu_dtype=jnp.bfloat16)     # bf16 (K, N)

    # Default (f32-operand, f32-accumulate) path.
    y = jax.block_until_ready(linear_forward(x, Wt))
    y_ref = x @ W.T
    assert y.shape == (batch, seq, out_features)
    assert jnp.allclose(y, y_ref, atol=1e-5, rtol=1e-5)

    # bf16 MXU operands + f32 accumulation (recommended for compute-bound shapes).
    y_bf16 = jax.block_until_ready(linear_forward(x, Wt_bf16, mxu_dtype=jnp.bfloat16))
    assert jnp.allclose(y_bf16, y_ref, atol=1e-1, rtol=1e-1)

    print("KERNEL_OK")
</pallas_src>

<mosaic_0001>
module attributes {stable_mosaic.version = 11 : i64} {
  func.func @_matmul_kernel_f32out(%arg0: i32, %arg1: i32, %arg2: i32, %arg3: memref<16x128xf32, #tpu.memory_space<vmem>>, %arg4: memref<128x128xf32, #tpu.memory_space<vmem>>, %arg5: memref<16x128xf32, #tpu.memory_space<vmem>>) attributes {dimension_semantics = [#tpu.dimension_semantics<parallel>, #tpu.dimension_semantics<parallel>, #tpu.dimension_semantics<arbitrary>], iteration_bounds = array<i64: 1, 1, 1>, scalar_prefetch = 0 : i64, scratch_operands = 0 : i64, tpu.core_type = #tpu.core_type<tc>, window_params = [{transform_indices = @transform_0, window_bounds = array<i64: 16, 128>}, {transform_indices = @transform_1, window_bounds = array<i64: 128, 128>}, {transform_indices = @transform_2, window_bounds = array<i64: 16, 128>}]} {
    %c0_i32 = arith.constant 0 : i32
    %0 = arith.cmpi eq, %arg2, %c0_i32 : i32
    %1 = arith.extui %0 : i1 to i32
    %c0_i32_0 = arith.constant 0 : i32
    %2 = arith.cmpi ne, %1, %c0_i32_0 : i32
    scf.if %2 {
      %cst_8 = arith.constant 0.000000e+00 : f32
      %9 = vector.broadcast %cst_8 : f32 to vector<16x128xf32>
      %c0_9 = arith.constant 0 : index
      %c0_10 = arith.constant 0 : index
      %10 = vector.load %arg5[%c0_9, %c0_10] : memref<16x128xf32, #tpu.memory_space<vmem>>, vector<16x128xf32>
      tpu.vector_store %arg5[%c0_9, %c0_10], %9 {strides = array<i32>} : memref<16x128xf32, #tpu.memory_space<vmem>>, vector<16x128xf32>,
    } else {
    }
    %c0 = arith.constant 0 : index
    %c0_1 = arith.constant 0 : index
    %3 = vector.load %arg5[%c0, %c0_1] : memref<16x128xf32, #tpu.memory_space<vmem>>, vector<16x128xf32>
    %c0_2 = arith.constant 0 : index
    %c0_3 = arith.constant 0 : index
    %4 = vector.load %arg3[%c0_2, %c0_3] : memref<16x128xf32, #tpu.memory_space<vmem>>, vector<16x128xf32>
    %c0_4 = arith.constant 0 : index
    %c0_5 = arith.constant 0 : index
    %5 = vector.load %arg4[%c0_4, %c0_5] : memref<128x128xf32, #tpu.memory_space<vmem>>, vector<128x128xf32>
    %cst = arith.constant dense<0.000000e+00> : vector<16x128xf32>
    %6 = tpu.matmul %4, %5, %cst {dimension_numbers = #tpu.dot_dimension_numbers<[1], [0], [0], [1], [0, 0, 1, 1], [], []>} : vector<16x128xf32>, vector<128x128xf32>, vector<16x128xf32> -> vector<16x128xf32>
    %7 = arith.addf %3, %6 : vector<16x128xf32>
    %c0_6 = arith.constant 0 : index
    %c0_7 = arith.constant 0 : index
    %8 = vector.load %arg5[%c0_6, %c0_7] : memref<16x128xf32, #tpu.memory_space<vmem>>, vector<16x128xf32>
    tpu.vector_store %arg5[%c0_6, %c0_7], %7 {strides = array<i32>} : memref<16x128xf32, #tpu.memory_space<vmem>>, vector<16x128xf32>,
    return
  }
  func.func @transform_0(%arg0: i32, %arg1: i32, %arg2: i32) -> (i32, i32) {
    %c0_i32 = arith.constant 0 : i32
    return %arg0, %arg2 : i32, i32
  }
  func.func @transform_1(%arg0: i32, %arg1: i32, %arg2: i32) -> (i32, i32) {
    %c0_i32 = arith.constant 0 : i32
    return %arg2, %arg1 : i32, i32
  }
  func.func @transform_2(%arg0: i32, %arg1: i32, %arg2: i32) -> (i32, i32) {
    %c0_i32 = arith.constant 0 : i32
    return %arg0, %arg1 : i32, i32
  }
}

</mosaic_0001>

<bundles_post_ra>
// kernel: linear_forward.1
= control target key start
LH: loop header
LB: loop body
LE: loop exit
PB: predicated region body
PF: predicated region fallthrough
CT: control target
= control target key end

     0   :  { %s281_s1 = inlined_call_operand.vmem [shape: f32[128,128], index: 1, kind: input, shape index: {}]   ;;  %s282_s0 = inlined_call_operand.vmem [shape: f32[16,128], index: 0, kind: input, shape index: {}]   ;;  %s283_s2 = inlined_call_operand.vmem [shape: f32[16,128], index: 2, kind: output, shape index: {}]  }
   0x1   :  { %v21_v0 = vld [vmem:[%s281_s1] sm:$0xff]  ;;  %v22_v1 = vld [vmem:[%s281_s1 + $0x8] sm:$0xff]  ;;  %v23_v2 = vld [vmem:[%s281_s1 + $0x10] sm:$0xff] }
   0x2   :  { %v173_v3 = vpack.c.bf16 %v22_v1, %v21_v0  ;;  %v24_v4 = vld [vmem:[%s281_s1 + $0x18] sm:$0xff]  ;;  %v25_v6 = vld [vmem:[%s281_s1 + $0x20] sm:$0xff]  ;;  %v26_v7 = vld [vmem:[%s281_s1 + $0x28] sm:$0xff] }
   0x3   :  { %v177_v5 = vpack.c.bf16 %v24_v4, %v23_v2  ;;  %v181_v8 = vpack.c.bf16 %v26_v7, %v25_v6  ;;  %v19_v9 = vld [vmem:[%s282_s0] sm:$0xff]  ;;  %v27_v10 = vld [vmem:[%s281_s1 + $0x30] sm:$0xff]  ;;  %v28_v11 = vld [vmem:[%s281_s1 + $0x38] sm:$0xff] }
   0x4   :  { %174 = vmatprep.subr.bf16.mxu0 %v173_v3  ;;  %170 = vmatprep.mubr.f32.mxu0 %v19_v9  ;;  %v185_v12 = vpack.c.bf16 %v28_v11, %v27_v10  ;;  %v29_v13 = vld [vmem:[%s281_s1 + $0x40] sm:$0xff]  ;;  %v30_v14 = vld [vmem:[%s281_s1 + $0x48] sm:$0xff]  ;;  %v31_v16 = vld [vmem:[%s281_s1 + $0x50] sm:$0xff] }
   0x5   :  { %176 = vmatpush3.bf16.msra.mxu0 %v173_v3  ;;  %v189_v15 = vpack.c.bf16 %v30_v14, %v29_v13  ;;  %v32_v17 = vld [vmem:[%s281_s1 + $0x58] sm:$0xff]  ;;  %v33_v19 = vld [vmem:[%s281_s1 + $0x60] sm:$0xff]  ;;  %v34_v20 = vld [vmem:[%s281_s1 + $0x68] sm:$0xff] }
   0x6   :  { %178 = vmatprep.subr.bf16.mxu0 %v177_v5  ;;  %v193_v18 = vpack.c.bf16 %v32_v17, %v31_v16  ;;  %v197_v21 = vpack.c.bf16 %v34_v20, %v33_v19  ;;  %v35_v22 = vld [vmem:[%s281_s1 + $0x70] sm:$0xff]  ;;  %v36_v23 = vld [vmem:[%s281_s1 + $0x78] sm:$0xff]  ;;  %v20_v25 = vld [vmem:[%s282_s0 + $0x8] sm:$0xff] }
   0x7   :  { %v201_v24 = vpack.c.bf16 %v36_v23, %v35_v22 }
   0x9   :  { %180 = vmatpush3.bf16.msra.mxu0 %v177_v5 }
   0xa   :  { %182 = vmatprep.subr.bf16.mxu0 %v181_v8 }
   0xd   :  { %184 = vmatpush3.bf16.msra.mxu0 %v181_v8 }
   0xe   :  { %186 = vmatprep.subr.bf16.mxu0 %v185_v12 }
  0x11   :  { %188 = vmatpush3.bf16.msra.mxu0 %v185_v12 }
  0x12   :  { %190 = vmatprep.subr.bf16.mxu0 %v189_v15 }
  0x15   :  { %192 = vmatpush3.bf16.msra.mxu0 %v189_v15 }
  0x16   :  { %194 = vmatprep.subr.bf16.mxu0 %v193_v18 }
  0x19   :  { %196 = vmatpush3.bf16.msra.mxu0 %v193_v18 }
  0x1a   :  { %198 = vmatprep.subr.bf16.mxu0 %v197_v21 }
  0x1d   :  { %200 = vmatpush3.bf16.msra.mxu0 %v197_v21 }
  0x1e   :  { %202 = vmatprep.subr.bf16.mxu0 %v201_v24 }
  0x21   :  { %204 = vmatpush3.bf16.msra.mxu0 %v201_v24 }
  0x24   :  { %171 = vmatmul.mubr.f32.vlgmr.msra.gmra.mrb[0].mxu0 %v20_v25 }
  0xf7   :  { %v172_v26 = vpop.f32.mrb[0].mxu0 }
  0xf8   :  { %v103_v27 = vpop.f32.mrb[1].mxu0  ;;  %115 = vst [vmem:[%s283_s2 + $0x8] sm:$0xff] %v172_v26 }
  0xf9   :  { %114 = vst [vmem:[%s283_s2] sm:$0xff] %v103_v27 }

</bundles_post_ra>
